<compile_context>
chip_gen: v7x
topology: tpu7x:2x2x1
jax: 0.10.0
libtpu: 0.0.40
codegen_flags: <defaults>
</compile_context>

<pallas_src>
import functools

import jax
import jax.numpy as jnp
from jax.experimental import pallas as pl
from jax.experimental.pallas import tpu as pltpu


INPUT_DIM = 1
HIDDEN = 128
ACTION_DIM = 4
OUT_HEAD = ACTION_DIM + 1   # rows 0..3 = action probs, row 4 = state value
LANE = 128                  # TPU lane width; batch tiles are lane multiples

assert INPUT_DIM == 1, "VPU-broadcast fc path assumes input_dim == 1"


def _actor_critic_kernel(x_ref, w_fc_ref, b_fc_ref, w_head_ref, b_head_ref,
                         out_ref):
    # x_ref:      [1, tb]        batch along lanes
    # w_fc_ref:   [128, 1]       fc weight (transposed, resident)
    # b_fc_ref:   [128, 1]       fc bias   (transposed, resident)
    # w_head_ref: [5, 128]       fused actor(4 rows)+critic(1 row) weight^T
    # b_head_ref: [5, 1]
    # out_ref:    [5, tb]        rows 0..3 = probs, row 4 = value

    # fc + ReLU on the VPU (K=1 contraction -> broadcast multiply).
    x_row = x_ref[...]                                               # [1, tb]
    h_t = jnp.maximum(w_fc_ref[...] * x_row + b_fc_ref[...], 0.0)    # [128, tb]

    # Fused actor+critic head: single MXU matmul, lane-dense result.
    y_t = jnp.dot(w_head_ref[...], h_t, preferred_element_type=jnp.float32)
    y_t = y_t + b_head_ref[...]                                      # [5, tb]

    # Numerically-stable softmax over the ACTION_DIM actor rows, computed on
    # explicit [1, tb] row slices (VPU/EUP only, no iota mask, no -inf).
    rows = [y_t[i:i + 1, :] for i in range(ACTION_DIM)]
    m = rows[0]
    for r in rows[1:]:
        m = jnp.maximum(m, r)
    exps = [jnp.exp(r - m) for r in rows]
    denom = exps[0]
    for e in exps[1:]:
        denom = denom + e
    inv = 1.0 / denom          # exact divide: probs sum to 1 to f32 precision

    for i in range(ACTION_DIM):
        out_ref[i:i + 1, :] = (exps[i] * inv).astype(out_ref.dtype)
    out_ref[ACTION_DIM:OUT_HEAD, :] = y_t[ACTION_DIM:OUT_HEAD, :].astype(out_ref.dtype)


def prepare_params(params):
    """Build kernel-layout (transposed / fused) parameters.

    Call once per parameter update, NOT per forward call — keeps the head
    fusion and transposes out of the hot path.
    """
    w_fc_t = params["w_fc"].T                                        # [128, 1]
    b_fc_t = params["b_fc"].reshape(HIDDEN, 1)                       # [128, 1]
    w_head_t = jnp.concatenate(
        [params["w_actor"].T, params["w_critic"].T], axis=0)         # [5, 128]
    b_head_t = jnp.concatenate(
        [params["b_actor"].reshape(ACTION_DIM, 1),
         params["b_critic"].reshape(1, 1)], axis=0)                  # [5, 1]
    return {"w_fc_t": w_fc_t, "b_fc_t": b_fc_t,
            "w_head_t": w_head_t, "b_head_t": b_head_t}


def _cdiv(a, b):
    return -(-a // b)


def _choose_tile(batch, block_b):
    """Lane-multiple batch tile: >=2 grid steps when batch allows (v7x has
    2 TensorCores), padding bounded by one tile, tile capped by block_b."""
    n_steps = max(_cdiv(batch, block_b), 2 if batch > LANE else 1)
    tb = max(LANE, _cdiv(_cdiv(batch, n_steps), LANE) * LANE)
    b_pad = _cdiv(batch, tb) * tb
    return tb, b_pad


@functools.partial(jax.jit, static_argnames=("block_b",))
def actor_critic_forward(x, prep, *, block_b=2048):
    """x: [B, 1] float32 -> (action_probs [B, ACTION_DIM], state_value [B, 1])."""
    batch, in_dim = x.shape
    assert in_dim == INPUT_DIM
    tb, b_pad = _choose_tile(batch, block_b)

    x_row = x.reshape(1, batch)                  # free: INPUT_DIM == 1
    if b_pad != batch:
        x_row = jnp.pad(x_row, ((0, 0), (0, b_pad - batch)))

    out = pl.pallas_call(
        _actor_critic_kernel,
        out_shape=jax.ShapeDtypeStruct((OUT_HEAD, b_pad), jnp.float32),
        grid=(b_pad // tb,),
        in_specs=[
            pl.BlockSpec((1, tb), lambda i: (0, i)),             # x: lane-tiled batch
            pl.BlockSpec((HIDDEN, 1), lambda i: (0, 0)),         # w_fc^T: resident
            pl.BlockSpec((HIDDEN, 1), lambda i: (0, 0)),         # b_fc^T: resident
            pl.BlockSpec((OUT_HEAD, HIDDEN), lambda i: (0, 0)),  # fused head W^T
            pl.BlockSpec((OUT_HEAD, 1), lambda i: (0, 0)),       # fused head b^T
        ],
        out_specs=pl.BlockSpec((OUT_HEAD, tb), lambda i: (0, i)),
        compiler_params=pltpu.CompilerParams(
            dimension_semantics=("parallel",)),                  # v7x: 2 TCs
    )(x_row, prep["w_fc_t"], prep["b_fc_t"], prep["w_head_t"], prep["b_head_t"])

    probs = out[:ACTION_DIM, :batch].T           # [B, ACTION_DIM]
    value = out[ACTION_DIM:OUT_HEAD, :batch].T   # [B, 1]
    return probs, value


def init_params(key):
    """Deterministic init mimicking PyTorch nn.Linear default (U[-1/sqrt(fan_in), +])."""
    ks = jax.random.split(key, 6)

    def uniform(k, shape, fan_in):
        bound = 1.0 / jnp.sqrt(jnp.float32(fan_in))
        return jax.random.uniform(k, shape, jnp.float32, -bound, bound)

    return {
        # weights stored as [in_features, out_features]
        "w_fc":     uniform(ks[0], (INPUT_DIM, HIDDEN), INPUT_DIM),
        "b_fc":     uniform(ks[1], (1, HIDDEN), INPUT_DIM),
        "w_actor":  uniform(ks[2], (HIDDEN, ACTION_DIM), HIDDEN),
        "b_actor":  uniform(ks[3], (1, ACTION_DIM), HIDDEN),
        "w_critic": uniform(ks[4], (HIDDEN, 1), HIDDEN),
        "b_critic": uniform(ks[5], (1, 1), HIDDEN),
    }


def reference_forward(x, p):
    """Pure-JAX reference of the PyTorch forward, for correctness checking."""
    h = jnp.maximum(x @ p["w_fc"] + p["b_fc"], 0.0)
    logits = h @ p["w_actor"] + p["b_actor"]
    probs = jax.nn.softmax(logits, axis=-1)
    value = h @ p["w_critic"] + p["b_critic"]
    return probs, value


if __name__ == "__main__":
    key = jax.random.PRNGKey(0)
    pkey, xkey = jax.random.split(key)

    params = init_params(pkey)
    prep = prepare_params(params)   # fused/transposed once, reused every call

    # small single-tile batch and a multi-tile (padded, grid=2) batch
    for batch in (8, 300):
        x = jax.random.normal(jax.random.fold_in(xkey, batch),
                              (batch, INPUT_DIM), jnp.float32)

        probs, value = actor_critic_forward(x, prep)
        jax.block_until_ready((probs, value))

        ref_probs, ref_value = reference_forward(x, params)
        assert probs.shape == (batch, ACTION_DIM)
        assert value.shape == (batch, 1)
        assert jnp.allclose(probs, ref_probs, atol=2e-3, rtol=2e-3), batch
        assert jnp.allclose(value, ref_value, atol=2e-3, rtol=2e-3), batch
        # exact divide -> probabilities normalize to f32 precision
        assert jnp.allclose(jnp.sum(probs, axis=-1), 1.0, atol=1e-3), batch

    print("KERNEL_OK")
</pallas_src>

<mosaic_0001>
module attributes {stable_mosaic.version = 11 : i64} {
  func.func @_actor_critic_kernel(%arg0: i32, %arg1: memref<1x128xf32, #tpu.memory_space<vmem>>, %arg2: memref<128x1xf32, #tpu.memory_space<vmem>>, %arg3: memref<128x1xf32, #tpu.memory_space<vmem>>, %arg4: memref<5x128xf32, #tpu.memory_space<vmem>>, %arg5: memref<5x1xf32, #tpu.memory_space<vmem>>, %arg6: memref<5x128xf32, #tpu.memory_space<vmem>>) attributes {dimension_semantics = [#tpu.dimension_semantics<parallel>], iteration_bounds = array<i64: 1>, scalar_prefetch = 0 : i64, scratch_operands = 0 : i64, tpu.core_type = #tpu.core_type<tc>, window_params = [{transform_indices = @transform_0, window_bounds = array<i64: 1, 128>}, {pipeline_mode = #tpu.pipeline_mode<synchronous>, transform_indices = @transform_1, window_bounds = array<i64: 128, 1>}, {pipeline_mode = #tpu.pipeline_mode<synchronous>, transform_indices = @transform_2, window_bounds = array<i64: 128, 1>}, {pipeline_mode = #tpu.pipeline_mode<synchronous>, transform_indices = @transform_3, window_bounds = array<i64: 5, 128>}, {pipeline_mode = #tpu.pipeline_mode<synchronous>, transform_indices = @transform_4, window_bounds = array<i64: 5, 1>}, {transform_indices = @transform_5, window_bounds = array<i64: 5, 128>}]} {
    %c0 = arith.constant 0 : index
    %c0_0 = arith.constant 0 : index
    %0 = vector.load %arg1[%c0, %c0_0] : memref<1x128xf32, #tpu.memory_space<vmem>>, vector<1x128xf32>
    %c0_1 = arith.constant 0 : index
    %c0_2 = arith.constant 0 : index
    %1 = vector.load %arg2[%c0_1, %c0_2] : memref<128x1xf32, #tpu.memory_space<vmem>>, vector<128x1xf32>
    %2 = vector.broadcast %1 : vector<128x1xf32> to vector<128x128xf32>
    %3 = vector.broadcast %0 : vector<1x128xf32> to vector<128x128xf32>
    %4 = arith.mulf %2, %3 : vector<128x128xf32>
    %c0_3 = arith.constant 0 : index
    %c0_4 = arith.constant 0 : index
    %5 = vector.load %arg3[%c0_3, %c0_4] : memref<128x1xf32, #tpu.memory_space<vmem>>, vector<128x1xf32>
    %6 = vector.broadcast %5 : vector<128x1xf32> to vector<128x128xf32>
    %7 = arith.addf %4, %6 : vector<128x128xf32>
    %cst = arith.constant 0.000000e+00 : f32
    %8 = vector.broadcast %cst : f32 to vector<128x128xf32>
    %9 = arith.maximumf %7, %8 : vector<128x128xf32>
    %c0_5 = arith.constant 0 : index
    %c0_6 = arith.constant 0 : index
    %10 = vector.load %arg4[%c0_5, %c0_6] : memref<5x128xf32, #tpu.memory_space<vmem>>, vector<5x128xf32>
    %cst_7 = arith.constant dense<0.000000e+00> : vector<5x128xf32>
    %11 = tpu.matmul %10, %9, %cst_7 {dimension_numbers = #tpu.dot_dimension_numbers<[1], [0], [0], [1], [0, 0, 1, 1], [], []>} : vector<5x128xf32>, vector<128x128xf32>, vector<5x128xf32> -> vector<5x128xf32>
    %c0_8 = arith.constant 0 : index
    %c0_9 = arith.constant 0 : index
    %12 = vector.load %arg5[%c0_8, %c0_9] : memref<5x1xf32, #tpu.memory_space<vmem>>, vector<5x1xf32>
    %13 = vector.broadcast %12 : vector<5x1xf32> to vector<5x128xf32>
    %14 = arith.addf %11, %13 : vector<5x128xf32>
    %15 = vector.extract_strided_slice %14 {offsets = [0, 0], sizes = [1, 128], strides = [1, 1]} : vector<5x128xf32> to vector<1x128xf32>
    %16 = vector.extract_strided_slice %14 {offsets = [1, 0], sizes = [1, 128], strides = [1, 1]} : vector<5x128xf32> to vector<1x128xf32>
    %17 = vector.extract_strided_slice %14 {offsets = [2, 0], sizes = [1, 128], strides = [1, 1]} : vector<5x128xf32> to vector<1x128xf32>
    %18 = vector.extract_strided_slice %14 {offsets = [3, 0], sizes = [1, 128], strides = [1, 1]} : vector<5x128xf32> to vector<1x128xf32>
    %19 = arith.maximumf %15, %16 : vector<1x128xf32>
    %20 = arith.maximumf %19, %17 : vector<1x128xf32>
    %21 = arith.maximumf %20, %18 : vector<1x128xf32>
    %22 = arith.subf %15, %21 : vector<1x128xf32>
    %23 = math.exp %22 : vector<1x128xf32>
    %24 = arith.subf %16, %21 : vector<1x128xf32>
    %25 = math.exp %24 : vector<1x128xf32>
    %26 = arith.subf %17, %21 : vector<1x128xf32>
    %27 = math.exp %26 : vector<1x128xf32>
    %28 = arith.subf %18, %21 : vector<1x128xf32>
    %29 = math.exp %28 : vector<1x128xf32>
    %30 = arith.addf %23, %25 : vector<1x128xf32>
    %31 = arith.addf %30, %27 : vector<1x128xf32>
    %32 = arith.addf %31, %29 : vector<1x128xf32>
    %cst_10 = arith.constant 1.000000e+00 : f32
    %33 = vector.broadcast %cst_10 : f32 to vector<1x128xf32>
    %34 = arith.divf %33, %32 : vector<1x128xf32>
    %35 = arith.mulf %23, %34 : vector<1x128xf32>
    %c0_11 = arith.constant 0 : index
    %c0_12 = arith.constant 0 : index
    %36 = vector.load %arg6[%c0_11, %c0_12] : memref<5x128xf32, #tpu.memory_space<vmem>>, vector<1x128xf32>
    tpu.vector_store %arg6[%c0_11, %c0_12], %35 {strides = array<i32>} : memref<5x128xf32, #tpu.memory_space<vmem>>, vector<1x128xf32>,
    %37 = arith.mulf %25, %34 : vector<1x128xf32>
    %c1 = arith.constant 1 : index
    %c0_13 = arith.constant 0 : index
    %38 = vector.load %arg6[%c1, %c0_13] : memref<5x128xf32, #tpu.memory_space<vmem>>, vector<1x128xf32>
    tpu.vector_store %arg6[%c1, %c0_13], %37 {strides = array<i32>} : memref<5x128xf32, #tpu.memory_space<vmem>>, vector<1x128xf32>,
    %39 = arith.mulf %27, %34 : vector<1x128xf32>
    %c2 = arith.constant 2 : index
    %c0_14 = arith.constant 0 : index
    %40 = vector.load %arg6[%c2, %c0_14] : memref<5x128xf32, #tpu.memory_space<vmem>>, vector<1x128xf32>
    tpu.vector_store %arg6[%c2, %c0_14], %39 {strides = array<i32>} : memref<5x128xf32, #tpu.memory_space<vmem>>, vector<1x128xf32>,
    %41 = arith.mulf %29, %34 : vector<1x128xf32>
    %c3 = arith.constant 3 : index
    %c0_15 = arith.constant 0 : index
    %42 = vector.load %arg6[%c3, %c0_15] : memref<5x128xf32, #tpu.memory_space<vmem>>, vector<1x128xf32>
    tpu.vector_store %arg6[%c3, %c0_15], %41 {strides = array<i32>} : memref<5x128xf32, #tpu.memory_space<vmem>>, vector<1x128xf32>,
    %43 = vector.extract_strided_slice %14 {offsets = [4, 0], sizes = [1, 128], strides = [1, 1]} : vector<5x128xf32> to vector<1x128xf32>
    %c4 = arith.constant 4 : index
    %c0_16 = arith.constant 0 : index
    %44 = vector.load %arg6[%c4, %c0_16] : memref<5x128xf32, #tpu.memory_space<vmem>>, vector<1x128xf32>
    tpu.vector_store %arg6[%c4, %c0_16], %43 {strides = array<i32>} : memref<5x128xf32, #tpu.memory_space<vmem>>, vector<1x128xf32>,
    return
  }
  func.func @transform_0(%arg0: i32) -> (i32, i32) {
    %c0_i32 = arith.constant 0 : i32
    %c0_i32_0 = arith.constant 0 : i32
    return %c0_i32, %arg0 : i32, i32
  }
  func.func @transform_1(%arg0: i32) -> (i32, i32) {
    %c0_i32 = arith.constant 0 : i32
    %c0_i32_0 = arith.constant 0 : i32
    %c0_i32_1 = arith.constant 0 : i32
    return %c0_i32, %c0_i32_0 : i32, i32
  }
  func.func @transform_2(%arg0: i32) -> (i32, i32) {
    %c0_i32 = arith.constant 0 : i32
    %c0_i32_0 = arith.constant 0 : i32
    %c0_i32_1 = arith.constant 0 : i32
    return %c0_i32, %c0_i32_0 : i32, i32
  }
  func.func @transform_3(%arg0: i32) -> (i32, i32) {
    %c0_i32 = arith.constant 0 : i32
    %c0_i32_0 = arith.constant 0 : i32
    %c0_i32_1 = arith.constant 0 : i32
    return %c0_i32, %c0_i32_0 : i32, i32
  }
  func.func @transform_4(%arg0: i32) -> (i32, i32) {
    %c0_i32 = arith.constant 0 : i32
    %c0_i32_0 = arith.constant 0 : i32
    %c0_i32_1 = arith.constant 0 : i32
    return %c0_i32, %c0_i32_0 : i32, i32
  }
  func.func @transform_5(%arg0: i32) -> (i32, i32) {
    %c0_i32 = arith.constant 0 : i32
    %c0_i32_0 = arith.constant 0 : i32
    return %c0_i32, %arg0 : i32, i32
  }
}

</mosaic_0001>

<bundles_post_ra>
// kernel: actor_critic_forward.1
= control target key start
LH: loop header
LB: loop body
LE: loop exit
PB: predicated region body
PF: predicated region fallthrough
CT: control target
= control target key end

     0   :  { %v500_v0 = vmov 0   ;;  %v501_v9 = vmov 0.0|0.0   ;;  %vm502_vm0 = vmmov 0   ;;  %v503_v35 = vmov 0.0   ;;  %s680_s2 = inlined_call_operand.vmem [shape: f32[128,1], index: 2, kind: input, shape index: {}]   ;;  %s681_s1 = inlined_call_operand.vmem [shape: f32[128,1], index: 1, kind: input, shape index: {}]   ;;  %s682_s4 = inlined_call_operand.vmem [shape: f32[5,1], index: 4, kind: input, shape index: {}]   ;;  %s683_s0 = inlined_call_operand.vmem [shape: f32[1,128], index: 0, kind: input, shape index: {}]   ;;  %s684_s3 = inlined_call_operand.vmem [shape: f32[5,128], index: 3, kind: input, shape index: {}]   ;;  %s685_s5 = inlined_call_operand.vmem [shape: f32[5,128], index: 5, kind: output, shape index: {}]  }
   0x1   :  { %489 = vset.pattern.permute.xlu1 %v500_v0  ;;  %488 = vset.pattern.permute.xlu0 %v500_v0  ;;  %v139_v1 = vld [vmem:[%s680_s2] sm:$0xff]  ;;  %v140_v3 = vld [vmem:[%s680_s2 + $0x8] sm:$0xff]  ;;  %v24_v5 = vld [vmem:[%s681_s1 + $0x18] sm:$0xff] }
   0x2   :  { %v21_v2 = vld [vmem:[%s681_s1] sm:$0xff]  ;;  %157 = vperm.xlu1 %489, %v139_v1   ;;  %v22_v4 = vld [vmem:[%s681_s1 + $0x8] sm:$0xff]  ;;  %v23_v6 = vld [vmem:[%s681_s1 + $0x10] sm:$0xff]  ;;  %460 = vmatprep.subr.bf16.mxu0 %v501_v9 }
   0x3   :  { %39 = vperm.xlu0 %488, %v21_v2   ;;  %v142_v7 = vld [vmem:[%s680_s2 + $0x18] sm:$0xff]  ;;  %v141_v8 = vld [vmem:[%s680_s2 + $0x10] sm:$0xff]  ;;  %v26_v10 = vld [vmem:[%s681_s1 + $0x28] sm:$0xff]  ;;  %457 = vmatprep.mubr.msk.f32.mxu0 %vm502_vm0, %v503_v35 }
   0x4   :  { %v25_v11 = vld [vmem:[%s681_s1 + $0x20] sm:$0xff]  ;;  %v144_v12 = vld [vmem:[%s680_s2 + $0x28] sm:$0xff]  ;;  %v28_v14 = vld [vmem:[%s681_s1 + $0x38] sm:$0xff] }
   0x5   :  { %v143_v13 = vld [vmem:[%s680_s2 + $0x20] sm:$0xff]  ;;  %v27_v15 = vld [vmem:[%s681_s1 + $0x30] sm:$0xff]  ;;  %v146_v16 = vld [vmem:[%s680_s2 + $0x38] sm:$0xff] }
   0x6   :  { %162 = vperm.xlu1 %489, %v140_v3   ;;  %v145_v17 = vld [vmem:[%s680_s2 + $0x30] sm:$0xff]  ;;  %v30_v18 = vld [vmem:[%s681_s1 + $0x48] sm:$0xff]  ;;  %v29_v19 = vld [vmem:[%s681_s1 + $0x40] sm:$0xff] }
   0x7   :  { %44 = vperm.xlu0 %488, %v22_v4   ;;  %v148_v20 = vld [vmem:[%s680_s2 + $0x48] sm:$0xff]  ;;  %v147_v21 = vld [vmem:[%s680_s2 + $0x40] sm:$0xff]  ;;  %v32_v22 = vld [vmem:[%s681_s1 + $0x58] sm:$0xff] }
   0x8   :  { %v31_v23 = vld [vmem:[%s681_s1 + $0x50] sm:$0xff]  ;;  %v150_v24 = vld [vmem:[%s680_s2 + $0x58] sm:$0xff]  ;;  %v34_v26 = vld [vmem:[%s681_s1 + $0x68] sm:$0xff] }
   0x9   :  { %v149_v25 = vld [vmem:[%s680_s2 + $0x50] sm:$0xff]  ;;  %v33_v27 = vld [vmem:[%s681_s1 + $0x60] sm:$0xff]  ;;  %v152_v28 = vld [vmem:[%s680_s2 + $0x68] sm:$0xff] }
   0xa   :  { %54 = vperm.xlu1 %489, %v24_v5   ;;  %v151_v29 = vld [vmem:[%s680_s2 + $0x60] sm:$0xff]  ;;  %v36_v30 = vld [vmem:[%s681_s1 + $0x78] sm:$0xff]  ;;  %v35_v31 = vld [vmem:[%s681_s1 + $0x70] sm:$0xff] }
   0xb   :  { %49 = vperm.xlu0 %488, %v23_v6   ;;  %v154_v32 = vld [vmem:[%s680_s2 + $0x78] sm:$0xff]  ;;  %v153_v33 = vld [vmem:[%s680_s2 + $0x70] sm:$0xff]  ;;  %v268_v34 = vld [vmem:[%s682_s4] sm:$0x1f] }
   0xc   :  { %v637_v36 = vld [vmem:[%s683_s0] ss:$0 sm:$0xff] }
   0xe   :  { %172 = vperm.xlu1 %489, %v142_v7  }
   0xf   :  { %167 = vperm.xlu0 %488, %v141_v8  }
  0x12   :  { %64 = vperm.xlu1 %489, %v26_v10  }
  0x13   :  { %59 = vperm.xlu0 %488, %v25_v11  }
  0x16   :  { %182 = vperm.xlu1 %489, %v144_v12  }
  0x17   :  { %177 = vperm.xlu0 %488, %v143_v13  }
  0x1a   :  { %74 = vperm.xlu1 %489, %v28_v14  }
  0x1b   :  { %69 = vperm.xlu0 %488, %v27_v15  }
  0x1e   :  { %192 = vperm.xlu1 %489, %v146_v16  }
  0x1f   :  { %187 = vperm.xlu0 %488, %v145_v17  }
  0x22   :  { %84 = vperm.xlu1 %489, %v30_v18  }
  0x23   :  { %79 = vperm.xlu0 %488, %v29_v19  }
  0x26   :  { %202 = vperm.xlu1 %489, %v148_v20  }
  0x27   :  { %197 = vperm.xlu0 %488, %v147_v21  }
  0x2a   :  { %94 = vperm.xlu1 %489, %v32_v22  }
  0x2b   :  { %89 = vperm.xlu0 %488, %v31_v23  }
  0x2e   :  { %212 = vperm.xlu1 %489, %v150_v24  }
  0x2f   :  { %207 = vperm.xlu0 %488, %v149_v25  }
  0x32   :  { %104 = vperm.xlu1 %489, %v34_v26  }
  0x33   :  { %99 = vperm.xlu0 %488, %v33_v27  }
  0x36   :  { %222 = vperm.xlu1 %489, %v152_v28  }
  0x37   :  { %217 = vperm.xlu0 %488, %v151_v29  }
  0x3a   :  { %114 = vperm.xlu1 %489, %v36_v30  }
  0x3b   :  { %109 = vperm.xlu0 %488, %v35_v31  }
  0x3e   :  { %232 = vperm.xlu1 %489, %v154_v32  }
  0x3f   :  { %227 = vperm.xlu0 %488, %v153_v33  }
  0x43   :  { %271 = vperm.xlu0 %488, %v268_v34  }
  0x81   :  { %v158_v37 = vpop.permute.xlu1 %157 }
  0x82   :  { %v40_v38 = vpop.permute.xlu0 %39 }
  0x83   :  { %v123_v39 = vmul.f32 %v637_v36, %v40_v38 }
  0x85   :  { %v163_v40 = vpop.permute.xlu1 %162  ;;  %v235_v42 = vadd.f32 %v158_v37, %v123_v39 }
  0x86   :  { %v45_v41 = vpop.permute.xlu0 %44 }
  0x87   :  { %v124_v43 = vmul.f32 %v637_v36, %v45_v41  ;;  %v251_v47 = vmax.f32 %v235_v42, 0.0 }
  0x89   :  { %v236_v44 = vadd.f32 %v163_v40, %v124_v43  ;;  %v55_v45 = vpop.permute.xlu1 %54 }
  0x8a   :  { %v50_v46 = vpop.permute.xlu0 %49  ;;  %v126_v49 = vmul.f32 %v637_v36, %v55_v45 }
  0x8b   :  { %v252_v48 = vmax.f32 %v236_v44, 0.0  ;;  %v125_v50 = vmul.f32 %v637_v36, %v50_v46 }
  0x8d   :  { %v461_v51 = vpack.c.bf16 %v252_v48, %v251_v47  ;;  %v173_v52 = vpop.permute.xlu1 %172 }
  0x8e   :  { %v168_v53 = vpop.permute.xlu0 %167  ;;  %v238_v54 = vadd.f32 %v173_v52, %v126_v49 }
  0x8f   :  { %v237_v55 = vadd.f32 %v168_v53, %v125_v50  ;;  %462 = vmatpush3.bf16.msra.mxu0 %v461_v51 }
  0x90   :  { %463 = vmatprep.subr.bf16.mxu0 %v501_v9  ;;  %v254_v56 = vmax.f32 %v238_v54, 0.0 }
  0x91   :  { %v253_v57 = vmax.f32 %v237_v55, 0.0  ;;  %v65_v58 = vpop.permute.xlu1 %64 }
  0x92   :  { %v60_v59 = vpop.permute.xlu0 %59  ;;  %v128_v61 = vmul.f32 %v637_v36, %v65_v58 }
  0x93   :  { %v464_v60 = vpack.c.bf16 %v254_v56, %v253_v57  ;;  %v127_v62 = vmul.f32 %v637_v36, %v60_v59 }
  0x95   :  { %465 = vmatpush3.bf16.msra.mxu0 %v464_v60  ;;  %v183_v63 = vpop.permute.xlu1 %182 }
  0x96   :  { %v178_v0 = vpop.permute.xlu0 %177  ;;  %466 = vmatprep.subr.bf16.mxu0 %v501_v9  ;;  %v240_v1 = vadd.f32 %v183_v63, %v128_v61  ;;  %v267_v63 = vld [vmem:[%s684_s3] sm:$0x1f] }
  0x97   :  { %v239_v2 = vadd.f32 %v178_v0, %v127_v62 }
  0x98   :  { %v256_v3 = vmax.f32 %v240_v1, 0.0 }
  0x99   :  { %v255_v4 = vmax.f32 %v239_v2, 0.0  ;;  %v75_v5 = vpop.permute.xlu1 %74 }
  0x9a   :  { %v70_v6 = vpop.permute.xlu0 %69  ;;  %v130_v8 = vmul.f32 %v637_v36, %v75_v5 }
  0x9b   :  { %v467_v7 = vpack.c.bf16 %v256_v3, %v255_v4  ;;  %v129_v10 = vmul.f32 %v637_v36, %v70_v6 }
  0x9d   :  { %468 = vmatpush3.bf16.msra.mxu0 %v467_v7  ;;  %v193_v11 = vpop.permute.xlu1 %192 }
  0x9e   :  { %v188_v12 = vpop.permute.xlu0 %187  ;;  %469 = vmatprep.subr.bf16.mxu0 %v501_v9  ;;  %v242_v13 = vadd.f32 %v193_v11, %v130_v8 }
  0x9f   :  { %v241_v14 = vadd.f32 %v188_v12, %v129_v10 }
  0xa0   :  { %v258_v15 = vmax.f32 %v242_v13, 0.0 }
  0xa1   :  { %v257_v16 = vmax.f32 %v241_v14, 0.0  ;;  %v85_v17 = vpop.permute.xlu1 %84 }
  0xa2   :  { %v80_v18 = vpop.permute.xlu0 %79  ;;  %v132_v20 = vmul.f32 %v637_v36, %v85_v17 }
  0xa3   :  { %v470_v19 = vpack.c.bf16 %v258_v15, %v257_v16  ;;  %v131_v21 = vmul.f32 %v637_v36, %v80_v18 }
  0xa5   :  { %471 = vmatpush3.bf16.msra.mxu0 %v470_v19  ;;  %v203_v22 = vpop.permute.xlu1 %202 }
  0xa6   :  { %v198_v23 = vpop.permute.xlu0 %197  ;;  %472 = vmatprep.subr.bf16.mxu0 %v501_v9  ;;  %v244_v24 = vadd.f32 %v203_v22, %v132_v20 }
  0xa7   :  { %v243_v25 = vadd.f32 %v198_v23, %v131_v21 }
  0xa8   :  { %v260_v26 = vmax.f32 %v244_v24, 0.0 }
  0xa9   :  { %v259_v27 = vmax.f32 %v243_v25, 0.0  ;;  %v95_v28 = vpop.permute.xlu1 %94 }
  0xaa   :  { %v90_v29 = vpop.permute.xlu0 %89  ;;  %v134_v31 = vmul.f32 %v637_v36, %v95_v28 }
  0xab   :  { %v473_v30 = vpack.c.bf16 %v260_v26, %v259_v27  ;;  %v133_v32 = vmul.f32 %v637_v36, %v90_v29 }
  0xad   :  { %474 = vmatpush3.bf16.msra.mxu0 %v473_v30  ;;  %v213_v33 = vpop.permute.xlu1 %212 }
  0xae   :  { %v208_v34 = vpop.permute.xlu0 %207  ;;  %475 = vmatprep.subr.bf16.mxu0 %v501_v9  ;;  %v246_v35 = vadd.f32 %v213_v33, %v134_v31 }
  0xaf   :  { %v245_v37 = vadd.f32 %v208_v34, %v133_v32 }
  0xb0   :  { %v262_v38 = vmax.f32 %v246_v35, 0.0 }
  0xb1   :  { %v261_v39 = vmax.f32 %v245_v37, 0.0  ;;  %v105_v40 = vpop.permute.xlu1 %104 }
  0xb2   :  { %v100_v41 = vpop.permute.xlu0 %99  ;;  %v136_v43 = vmul.f32 %v637_v36, %v105_v40 }
  0xb3   :  { %v476_v42 = vpack.c.bf16 %v262_v38, %v261_v39  ;;  %v135_v44 = vmul.f32 %v637_v36, %v100_v41 }
  0xb5   :  { %477 = vmatpush3.bf16.msra.mxu0 %v476_v42  ;;  %v223_v45 = vpop.permute.xlu1 %222 }
  0xb6   :  { %v218_v46 = vpop.permute.xlu0 %217  ;;  %478 = vmatprep.subr.bf16.mxu0 %v501_v9  ;;  %v248_v47 = vadd.f32 %v223_v45, %v136_v43 }
  0xb7   :  { %v247_v48 = vadd.f32 %v218_v46, %v135_v44 }
  0xb8   :  { %v264_v49 = vmax.f32 %v248_v47, 0.0 }
  0xb9   :  { %v263_v50 = vmax.f32 %v247_v48, 0.0  ;;  %v115_v51 = vpop.permute.xlu1 %114 }
  0xba   :  { %v110_v52 = vpop.permute.xlu0 %109  ;;  %v138_v54 = vmul.f32 %v637_v36, %v115_v51 }
  0xbb   :  { %v479_v53 = vpack.c.bf16 %v264_v49, %v263_v50  ;;  %v137_v55 = vmul.f32 %v637_v36, %v110_v52 }
  0xbd   :  { %480 = vmatpush3.bf16.msra.mxu0 %v479_v53  ;;  %v233_v56 = vpop.permute.xlu1 %232 }
  0xbe   :  { %v228_v57 = vpop.permute.xlu0 %227  ;;  %481 = vmatprep.subr.bf16.mxu0 %v501_v9  ;;  %v250_v58 = vadd.f32 %v233_v56, %v138_v54 }
  0xbf   :  { %v249_v59 = vadd.f32 %v228_v57, %v137_v55 }
  0xc0   :  { %v266_v60 = vmax.f32 %v250_v58, 0.0 }
  0xc1   :  { %v265_v61 = vmax.f32 %v249_v59, 0.0 }
  0xc2   :  { %v272_v0 = vpop.permute.xlu0 %271 }
  0xc3   :  { %v482_v62 = vpack.c.bf16 %v266_v60, %v265_v61 }
  0xc5   :  { %483 = vmatpush3.bf16.msra.mxu0 %v482_v62 }
  0xc8   :  { %458 = vmatmul.mubr.f32.vlgmr.msra.gmra.mrb[0].mxu0 %v267_v63 }
 0x19b   :  { %v340_v1 = vpop.f32.mrb[0].mxu0 }
 0x19c   :  { %v341_v2 = vadd.f32 %v340_v1, %v272_v0  ;;  %v459_v36 = vpop.f32.mrb[1].mxu0 }
 0x19e   :  { %v345_v3 = vrot.slane %v341_v2, 1  ;;  %402 = vst [vmem:[%s685_s5] sm:$0x10] %v341_v2  ;;  %v348_v4 = vrot.slane %v341_v2, 2  ;;  %v351_v6 = vrot.slane %v341_v2, 3 }
 0x1a0   :  { %v347_v9 = vmax.f32 %v341_v2, %v345_v3 }
 0x1a2   :  { %v350_v5 = vmax.f32 %v347_v9, %v348_v4 }
 0x1a4   :  { %v353_v7 = vmax.f32 %v350_v5, %v351_v6 }
 0x1a6   :  { %v354_v8 = vsub.f32 %v341_v2, %v353_v7  ;;  %v358_v10 = vrot.slane %v353_v7, 7  ;;  %v363_v11 = vrot.slane %v353_v7, 6  ;;  %v368_v12 = vrot.slane %v353_v7, 5 }
 0x1a8   :  { %v355_v13 = vmul.f32 1.442695, %v354_v8  ;;  %v360_v14 = vsub.f32 %v341_v2, %v358_v10  ;;  %v365_v15 = vsub.f32 %v341_v2, %v363_v11  ;;  %v370_v16 = vsub.f32 %v341_v2, %v368_v12 }
 0x1aa   :  { %v361_v17 = vmul.f32 1.442695, %v360_v14  ;;  %v366_v18 = vmul.f32 1.442695, %v365_v15  ;;  %v371_v19 = vmul.f32 1.442695, %v370_v16  ;;  %490 = vpow2.f32 %v355_v13 }
 0x1ac   :  { %492 = vpow2.f32 %v361_v17 }
 0x1ad   :  { %494 = vpow2.f32 %v366_v18 }
 0x1ae   :  { %496 = vpow2.f32 %v371_v19 }
 0x1b4   :  { %v491_v20 = vpop.eup %490 }
 0x1b6   :  { %v493_v21 = vpop.eup %492 }
 0x1b7   :  { %v495_v22 = vpop.eup %494  ;;  %v374_v23 = vrot.slane %v493_v21, 1 }
 0x1b8   :  { %v497_v24 = vpop.eup %496  ;;  %v378_v26 = vrot.slane %v495_v22, 2 }
 0x1b9   :  { %v376_v25 = vadd.f32 %v491_v20, %v374_v23  ;;  %v382_v28 = vrot.slane %v497_v24, 3 }
 0x1bb   :  { %v380_v27 = vadd.f32 %v378_v26, %v376_v25 }
 0x1bd   :  { %v384_v29 = vadd.f32 %v382_v28, %v380_v27 }
 0x1bf   :  { %498 = vrcp.f32 %v384_v29 }
 0x1c9   :  { %v499_v30 = vpop.eup %498 }
 0x1ca   :  { %v387_v31 = vmul.f32 %v499_v30, %v491_v20  ;;  %v390_v32 = vrot.slane %v499_v30, 7  ;;  %v394_v33 = vrot.slane %v499_v30, 6  ;;  %v398_v34 = vrot.slane %v499_v30, 5 }
 0x1cc   :  { %388 = vst [vmem:[%s685_s5] sm:$0x1] %v387_v31  ;;  %v392_v35 = vmul.f32 %v493_v21, %v390_v32  ;;  %v396_v37 = vmul.f32 %v495_v22, %v394_v33  ;;  %v400_v38 = vmul.f32 %v497_v24, %v398_v34 }
 0x1ce   :  { %393 = vst [vmem:[%s685_s5] sm:$0x2] %v392_v35  ;;  %397 = vst [vmem:[%s685_s5] sm:$0x4] %v396_v37 }
 0x1cf   :  { %401 = vst [vmem:[%s685_s5] sm:$0x8] %v400_v38 }

</bundles_post_ra>
